<compile_context>
chip_gen: v6e
topology: v6e:2x2x1
jax: 0.10.0
libtpu: 0.0.40
codegen_flags: <defaults>
</compile_context>

<pallas_src>
import functools
import math

import jax
import jax.numpy as jnp
from jax import lax
from jax.experimental import pallas as pl
from jax.experimental.pallas import tpu as pltpu


def _self_attention_kernel(
    hs_ref,      # (1, S, H)       hidden states for this batch element (mxu_dtype)
    mask_ref,    # (1, 1, S)       additive attention mask (f32)
    w_ref,       # (H, 3*HW)       packed [Wq | Wk | Wv] columns for this head group
    b_ref,       # (1, 3*HW)       packed [bq | bk | bv] (f32)
    ctx_ref,     # (1, S, HW)      output context slice for this head group
    *probs_refs,  # optionally (1, HPB, S, S) attention probabilities
    head_dim: int,
    heads_per_block: int,
    mxu_dtype,
):
    probs_ref = probs_refs[0] if probs_refs else None
    HW = heads_per_block * head_dim

    hs = hs_ref[0]          # (S, H)
    mask = mask_ref[0]      # (1, S) — broadcasts over query rows

    scale = 1.0 / math.sqrt(head_dim)

    # Fused Q/K/V projection for this head group: one MXU pass of width 3*HW,
    # accumulated in f32.
    qkv = jnp.dot(hs, w_ref[...], preferred_element_type=jnp.float32) + b_ref[...]
    q = qkv[:, 0:HW] * scale        # fold 1/sqrt(D) into q (S*HW mults, not S*S)
    k = qkv[:, HW:2 * HW]
    v = qkv[:, 2 * HW:3 * HW]

    ctx_parts = []
    # Small static loop (2–4 heads per group).
    for hh in range(heads_per_block):
        lo = hh * head_dim
        hi = lo + head_dim
        qh = q[:, lo:hi].astype(mxu_dtype)   # (S, D)
        kh = k[:, lo:hi].astype(mxu_dtype)   # (S, D)
        vh = v[:, lo:hi].astype(mxu_dtype)   # (S, D)

        # scores = qh @ kh^T: contract last dims directly (no explicit .T / XLU).
        scores = lax.dot_general(
            qh, kh, (((1,), (1,)), ((), ())),
            preferred_element_type=jnp.float32)           # (S, S) f32
        scores = scores + mask                             # additive HF mask

        # Max-stabilized softmax along the key axis (f32 VPU/EUP).
        m = jnp.max(scores, axis=-1, keepdims=True)
        e = jnp.exp(scores - m)
        denom = jnp.sum(e, axis=-1, keepdims=True)

        if probs_ref is not None:
            # Exact reciprocal on the probs that are returned to the caller.
            probs = e * pl.reciprocal(denom, approx=False)          # (S, S)
            probs_ref[0, hh] = probs.astype(probs_ref.dtype)
            ctx_h = jnp.dot(probs.astype(mxu_dtype), vh,
                            preferred_element_type=jnp.float32)     # (S, D)
        else:
            # Probs not requested: normalize AFTER the value matmul
            # (S*D multiplies instead of S*S), approx EUP reciprocal is fine.
            ctx_h = jnp.dot(e.astype(mxu_dtype), vh,
                            preferred_element_type=jnp.float32)
            ctx_h = ctx_h * pl.reciprocal(denom, approx=True)

        ctx_parts.append(ctx_h)

    # Single full-lane-width store for the whole head group.
    ctx_ref[0] = jnp.concatenate(ctx_parts, axis=-1).astype(ctx_ref.dtype)


def _pick_heads_per_block(num_heads: int, head_dim: int, target_lanes: int = 256) -> int:
    """Largest head group whose lane width is a 128-multiple and <= target_lanes.

    target_lanes=256 is a good v7x default (64 MiB VMEM); use 512 on v6e/v5e
    (128 MiB VMEM). Falls back to all heads (block == full hidden dim, always a
    legal block) when the hidden size is too small to reach 128 lanes."""
    best = None
    for hpb in range(1, num_heads + 1):
        if num_heads % hpb:
            continue
        lanes = hpb * head_dim
        if lanes % 128 == 0 and lanes <= target_lanes:
            best = hpb
    return best if best is not None else num_heads


def _pack_qkv(wq, wk, wv, bq, bk, bv, num_head_blocks, block_width, mxu_dtype):
    """Pack per-head-group [Wq | Wk | Wv] columns contiguously.

    Returns (H, HB*3*HW) weights (cast to mxu_dtype) and (1, HB*3*HW) biases
    (f32) so a single BlockSpec column slice covers one head group's fused
    QKV projection."""
    H = wq.shape[0]
    HB, HW = num_head_blocks, block_width

    def pack_w(w):
        return w.reshape(H, HB, HW)

    def pack_b(b):
        return b.reshape(1, HB, HW)

    w_packed = jnp.stack([pack_w(wq), pack_w(wk), pack_w(wv)], axis=2)   # (H, HB, 3, HW)
    b_packed = jnp.stack([pack_b(bq), pack_b(bk), pack_b(bv)], axis=2)   # (1, HB, 3, HW)
    w_packed = w_packed.reshape(H, HB * 3 * HW).astype(mxu_dtype)
    b_packed = b_packed.reshape(1, HB * 3 * HW).astype(jnp.float32)
    return w_packed, b_packed


def roberta_prelayernorm_self_attention(
    hidden_states,          # (B, S, H)
    attention_mask,         # (B, 1, S) additive
    params,                 # dict of wq/bq/wk/bk/wv/bv
    num_attention_heads,
    *,
    heads_per_block=None,
    target_lanes=256,              # raise to 512 on v6e/v5e (128 MiB VMEM)
    mxu_dtype=jnp.bfloat16,        # MXU operand dtype (f32 accumulation always)
    probs_dtype=jnp.bfloat16,      # halves the dominant probs HBM writeback
    return_probs=True,             # False -> skip probs output + folded softmax
    vmem_limit_bytes=48 * 1024 * 1024,
):
    B, S, H = hidden_states.shape
    assert H % num_attention_heads == 0
    NH = num_attention_heads
    D = H // NH

    if heads_per_block is None:
        heads_per_block = _pick_heads_per_block(NH, D, target_lanes)
    assert NH % heads_per_block == 0
    HPB = heads_per_block
    HB = NH // HPB           # number of head groups (outer grid axis)
    HW = HPB * D             # lane width of one head group

    wqkv, bqkv = _pack_qkv(
        params["wq"], params["wk"], params["wv"],
        params["bq"], params["bk"], params["bv"],
        HB, HW, mxu_dtype)

    # Cast streamed operands once in the wrapper (halves their HBM traffic
    # inside the kernel when mxu_dtype is bf16).
    hs = hidden_states.astype(mxu_dtype)
    mask = attention_mask.astype(jnp.float32)

    kernel = functools.partial(
        _self_attention_kernel, head_dim=D, heads_per_block=HPB,
        mxu_dtype=mxu_dtype)

    out_shapes = [jax.ShapeDtypeStruct((B, S, H), hidden_states.dtype)]   # context
    out_specs = [pl.BlockSpec((1, S, HW), lambda h, b: (b, 0, h))]
    if return_probs:
        out_shapes.append(jax.ShapeDtypeStruct((B, NH, S, S), probs_dtype))
        out_specs.append(pl.BlockSpec((1, HPB, S, S), lambda h, b: (b, h, 0, 0)))

    grid_spec = pltpu.PrefetchScalarGridSpec(
        num_scalar_prefetch=0,
        # Batch innermost: the weight block index is constant over it, so each
        # head group's fused QKV weights are DMA'd once and stay resident
        # across the whole batch loop.
        grid=(HB, B),
        in_specs=[
            pl.BlockSpec((1, S, H), lambda h, b: (b, 0, 0)),        # hidden states
            pl.BlockSpec((1, 1, S), lambda h, b: (b, 0, 0)),        # mask
            pl.BlockSpec((H, 3 * HW), lambda h, b: (0, h)),         # packed Wqkv
            pl.BlockSpec((1, 3 * HW), lambda h, b: (0, h)),         # packed bqkv
        ],
        out_specs=out_specs,
    )

    outs = pl.pallas_call(
        kernel,
        out_shape=out_shapes,
        grid_spec=grid_spec,
        compiler_params=pltpu.CompilerParams(
            # Both axes independent -> runtime may shard across TensorCores on
            # multi-TC chips (v7x); the (usually even) batch axis gives the
            # balanced split.
            dimension_semantics=("parallel", "parallel"),
            # Explicit scoped-VMEM ceiling; stays under v7x's 64 MiB per TC.
            # TODO(synk): raise toward ~96 MiB on v6e/v5e together with
            #             target_lanes=512.
            vmem_limit_bytes=vmem_limit_bytes,
        ),
    )(hs, mask, wqkv, bqkv)

    ctx = outs[0]
    probs = outs[1] if return_probs else None
    return ctx, probs


def _reference(hidden_states, attention_mask, params, num_heads):
    """Plain-JAX reference mirroring the PyTorch forward (absolute positions)."""
    B, S, H = hidden_states.shape
    D = H // num_heads

    def proj(x, w, b):
        y = x @ w + b[0]
        return y.reshape(B, S, num_heads, D).transpose(0, 2, 1, 3)  # (B, NH, S, D)

    q = proj(hidden_states, params["wq"], params["bq"])
    k = proj(hidden_states, params["wk"], params["bk"])
    v = proj(hidden_states, params["wv"], params["bv"])

    scores = jnp.einsum("bhqd,bhkd->bhqk", q, k) / math.sqrt(D)
    scores = scores + attention_mask[:, None, :, :]          # (B,1,1,S) broadcast
    probs = jax.nn.softmax(scores, axis=-1)
    ctx = jnp.einsum("bhqk,bhkd->bhqd", probs, v)
    ctx = ctx.transpose(0, 2, 1, 3).reshape(B, S, H)
    return ctx, probs


if __name__ == "__main__":
    # Small, module-consistent shapes: batch=2, seq=8, hidden=32, heads=4.
    B, S, H, NH = 2, 8, 32, 4

    key = jax.random.PRNGKey(0)
    ks = jax.random.split(key, 8)

    hidden_states = jax.random.normal(ks[0], (B, S, H), dtype=jnp.float32)

    # Additive mask: 0 for attended positions, -1e9 for masked (last 2 keys of batch 1).
    mask = jnp.zeros((B, 1, S), dtype=jnp.float32)
    mask = mask.at[1, 0, -2:].set(-1e9)

    scale = 1.0 / math.sqrt(H)
    params = {
        "wq": jax.random.normal(ks[1], (H, H), dtype=jnp.float32) * scale,
        "bq": jax.random.normal(ks[2], (1, H), dtype=jnp.float32) * 0.01,
        "wk": jax.random.normal(ks[3], (H, H), dtype=jnp.float32) * scale,
        "bk": jax.random.normal(ks[4], (1, H), dtype=jnp.float32) * 0.01,
        "wv": jax.random.normal(ks[5], (H, H), dtype=jnp.float32) * scale,
        "bv": jax.random.normal(ks[6], (1, H), dtype=jnp.float32) * 0.01,
    }

    ctx_ref, probs_ref = _reference(hidden_states, mask, params, NH)

    # 1) Exact-semantics check: f32 MXU path, f32 probs (tight tolerance).
    ctx32, probs32 = roberta_prelayernorm_self_attention(
        hidden_states, mask, params, NH,
        mxu_dtype=jnp.float32, probs_dtype=jnp.float32)
    jax.block_until_ready((ctx32, probs32))
    assert ctx32.shape == (B, S, H)
    assert probs32.shape == (B, NH, S, S)
    assert jnp.allclose(ctx32, ctx_ref, atol=2e-3, rtol=2e-3), "f32 context mismatch"
    assert jnp.allclose(probs32, probs_ref, atol=2e-3, rtol=2e-3), "f32 probs mismatch"

    # 2) Default fast path: bf16 MXU operands + bf16 probs writeback.
    ctx_bf, probs_bf = roberta_prelayernorm_self_attention(
        hidden_states, mask, params, NH)
    jax.block_until_ready((ctx_bf, probs_bf))
    assert jnp.allclose(ctx_bf, ctx_ref, atol=6e-2, rtol=6e-2), "bf16 context mismatch"
    assert jnp.allclose(probs_bf.astype(jnp.float32), probs_ref,
                        atol=6e-2, rtol=6e-2), "bf16 probs mismatch"

    # 3) Context-only fast path: no probs output, folded softmax normalization.
    ctx_only, probs_none = roberta_prelayernorm_self_attention(
        hidden_states, mask, params, NH, return_probs=False)
    jax.block_until_ready(ctx_only)
    assert probs_none is None
    assert jnp.allclose(ctx_only, ctx_ref, atol=6e-2, rtol=6e-2), \
        "context-only path mismatch"

    print("KERNEL_OK")
</pallas_src>

<mosaic_0001>
module attributes {stable_mosaic.version = 11 : i64} {
  func.func @_self_attention_kernel(%arg0: i32, %arg1: i32, %arg2: memref<1x8x32xf32, #tpu.memory_space<vmem>>, %arg3: memref<1x1x8xf32, #tpu.memory_space<vmem>>, %arg4: memref<32x96xf32, #tpu.memory_space<vmem>>, %arg5: memref<1x96xf32, #tpu.memory_space<vmem>>, %arg6: memref<1x8x32xf32, #tpu.memory_space<vmem>>, %arg7: memref<1x4x8x8xf32, #tpu.memory_space<vmem>>) attributes {dimension_semantics = [#tpu.dimension_semantics<parallel>, #tpu.dimension_semantics<parallel>], iteration_bounds = array<i64: 1, 2>, scalar_prefetch = 0 : i64, scratch_operands = 0 : i64, tpu.core_type = #tpu.core_type<tc>, window_params = [{transform_indices = @transform_0, window_bounds = array<i64: 1, 8, 32>}, {transform_indices = @transform_1, window_bounds = array<i64: 1, 1, 8>}, {transform_indices = @transform_2, window_bounds = array<i64: 32, 96>}, {transform_indices = @transform_3, window_bounds = array<i64: 1, 96>}, {transform_indices = @transform_4, window_bounds = array<i64: 1, 8, 32>}, {transform_indices = @transform_5, window_bounds = array<i64: 1, 4, 8, 8>}]} {
    %c0 = arith.constant 0 : index
    %c0_0 = arith.constant 0 : index
    %c0_1 = arith.constant 0 : index
    %0 = vector.load %arg2[%c0, %c0_0, %c0_1] : memref<1x8x32xf32, #tpu.memory_space<vmem>>, vector<1x8x32xf32>
    %1 = vector.shape_cast %0 : vector<1x8x32xf32> to vector<8x32xf32>
    %c0_2 = arith.constant 0 : index
    %c0_3 = arith.constant 0 : index
    %c0_4 = arith.constant 0 : index
    %2 = vector.load %arg3[%c0_2, %c0_3, %c0_4] : memref<1x1x8xf32, #tpu.memory_space<vmem>>, vector<1x1x8xf32>
    %3 = vector.shape_cast %2 : vector<1x1x8xf32> to vector<1x8xf32>
    %c0_5 = arith.constant 0 : index
    %c0_6 = arith.constant 0 : index
    %4 = vector.load %arg4[%c0_5, %c0_6] : memref<32x96xf32, #tpu.memory_space<vmem>>, vector<32x96xf32>
    %cst = arith.constant dense<0.000000e+00> : vector<8x96xf32>
    %5 = tpu.matmul %1, %4, %cst {dimension_numbers = #tpu.dot_dimension_numbers<[1], [0], [0], [1], [0, 0, 1, 1], [], []>} : vector<8x32xf32>, vector<32x96xf32>, vector<8x96xf32> -> vector<8x96xf32>
    %c0_7 = arith.constant 0 : index
    %c0_8 = arith.constant 0 : index
    %6 = vector.load %arg5[%c0_7, %c0_8] : memref<1x96xf32, #tpu.memory_space<vmem>>, vector<1x96xf32>
    %7 = vector.broadcast %6 : vector<1x96xf32> to vector<8x96xf32>
    %8 = arith.addf %5, %7 : vector<8x96xf32>
    %9 = vector.extract_strided_slice %8 {offsets = [0, 0], sizes = [8, 32], strides = [1, 1]} : vector<8x96xf32> to vector<8x32xf32>
    %cst_9 = arith.constant 0.353553385 : f32
    %10 = vector.broadcast %cst_9 : f32 to vector<8x32xf32>
    %11 = arith.mulf %9, %10 : vector<8x32xf32>
    %12 = vector.extract_strided_slice %8 {offsets = [0, 32], sizes = [8, 32], strides = [1, 1]} : vector<8x96xf32> to vector<8x32xf32>
    %13 = vector.extract_strided_slice %8 {offsets = [0, 64], sizes = [8, 32], strides = [1, 1]} : vector<8x96xf32> to vector<8x32xf32>
    %14 = vector.extract_strided_slice %11 {offsets = [0, 0], sizes = [8, 8], strides = [1, 1]} : vector<8x32xf32> to vector<8x8xf32>
    %15 = vector.extract_strided_slice %12 {offsets = [0, 0], sizes = [8, 8], strides = [1, 1]} : vector<8x32xf32> to vector<8x8xf32>
    %16 = vector.extract_strided_slice %13 {offsets = [0, 0], sizes = [8, 8], strides = [1, 1]} : vector<8x32xf32> to vector<8x8xf32>
    %cst_10 = arith.constant dense<0.000000e+00> : vector<8x8xf32>
    %17 = tpu.matmul %14, %15, %cst_10 {dimension_numbers = #tpu.dot_dimension_numbers<[1], [1], [0], [0], [0, 0, 1, 0], [], []>} : vector<8x8xf32>, vector<8x8xf32>, vector<8x8xf32> -> vector<8x8xf32>
    %18 = vector.broadcast %3 : vector<1x8xf32> to vector<8x8xf32>
    %19 = arith.addf %17, %18 : vector<8x8xf32>
    %cst_11 = arith.constant dense<0xFF800000> : vector<8xf32>
    %20 = vector.multi_reduction <maximumf>, %19, %cst_11 [1] : vector<8x8xf32> to vector<8xf32>
    %21 = vector.shape_cast %20 : vector<8xf32> to vector<8x1xf32>
    %22 = vector.broadcast %21 : vector<8x1xf32> to vector<8x8xf32>
    %23 = arith.subf %19, %22 : vector<8x8xf32>
    %24 = math.exp %23 : vector<8x8xf32>
    %cst_12 = arith.constant dense<0.000000e+00> : vector<8xf32>
    %25 = vector.multi_reduction <add>, %24, %cst_12 [1] : vector<8x8xf32> to vector<8xf32>
    %26 = vector.shape_cast %25 : vector<8xf32> to vector<8x1xf32>
    %27 = tpu.reciprocal %26 : vector<8x1xf32> -> vector<8x1xf32>
    %28 = vector.broadcast %27 : vector<8x1xf32> to vector<8x8xf32>
    %29 = arith.mulf %24, %28 : vector<8x8xf32>
    %c0_13 = arith.constant 0 : index
    %c0_14 = arith.constant 0 : index
    %c0_15 = arith.constant 0 : index
    %c0_16 = arith.constant 0 : index
    %30 = vector.load %arg7[%c0_13, %c0_14, %c0_15, %c0_16] : memref<1x4x8x8xf32, #tpu.memory_space<vmem>>, vector<1x1x8x8xf32>
    %31 = vector.shape_cast %30 : vector<1x1x8x8xf32> to vector<8x8xf32>
    %32 = vector.shape_cast %29 : vector<8x8xf32> to vector<1x1x8x8xf32>
    tpu.vector_store %arg7[%c0_13, %c0_14, %c0_15, %c0_16], %32 {strides = array<i32>} : memref<1x4x8x8xf32, #tpu.memory_space<vmem>>, vector<1x1x8x8xf32>,
    %cst_17 = arith.constant dense<0.000000e+00> : vector<8x8xf32>
    %33 = tpu.matmul %29, %16, %cst_17 {dimension_numbers = #tpu.dot_dimension_numbers<[1], [0], [0], [1], [0, 0, 1, 1], [], []>} : vector<8x8xf32>, vector<8x8xf32>, vector<8x8xf32> -> vector<8x8xf32>
    %34 = vector.extract_strided_slice %11 {offsets = [0, 8], sizes = [8, 8], strides = [1, 1]} : vector<8x32xf32> to vector<8x8xf32>
    %35 = vector.extract_strided_slice %12 {offsets = [0, 8], sizes = [8, 8], strides = [1, 1]} : vector<8x32xf32> to vector<8x8xf32>
    %36 = vector.extract_strided_slice %13 {offsets = [0, 8], sizes = [8, 8], strides = [1, 1]} : vector<8x32xf32> to vector<8x8xf32>
    %cst_18 = arith.constant dense<0.000000e+00> : vector<8x8xf32>
    %37 = tpu.matmul %34, %35, %cst_18 {dimension_numbers = #tpu.dot_dimension_numbers<[1], [1], [0], [0], [0, 0, 1, 0], [], []>} : vector<8x8xf32>, vector<8x8xf32>, vector<8x8xf32> -> vector<8x8xf32>
    %38 = vector.broadcast %3 : vector<1x8xf32> to vector<8x8xf32>
    %39 = arith.addf %37, %38 : vector<8x8xf32>
    %cst_19 = arith.constant dense<0xFF800000> : vector<8xf32>
    %40 = vector.multi_reduction <maximumf>, %39, %cst_19 [1] : vector<8x8xf32> to vector<8xf32>
    %41 = vector.shape_cast %40 : vector<8xf32> to vector<8x1xf32>
    %42 = vector.broadcast %41 : vector<8x1xf32> to vector<8x8xf32>
    %43 = arith.subf %39, %42 : vector<8x8xf32>
    %44 = math.exp %43 : vector<8x8xf32>
    %cst_20 = arith.constant dense<0.000000e+00> : vector<8xf32>
    %45 = vector.multi_reduction <add>, %44, %cst_20 [1] : vector<8x8xf32> to vector<8xf32>
    %46 = vector.shape_cast %45 : vector<8xf32> to vector<8x1xf32>
    %47 = tpu.reciprocal %46 : vector<8x1xf32> -> vector<8x1xf32>
    %48 = vector.broadcast %47 : vector<8x1xf32> to vector<8x8xf32>
    %49 = arith.mulf %44, %48 : vector<8x8xf32>
    %c0_21 = arith.constant 0 : index
    %c1 = arith.constant 1 : index
    %c0_22 = arith.constant 0 : index
    %c0_23 = arith.constant 0 : index
    %50 = vector.load %arg7[%c0_21, %c1, %c0_22, %c0_23] : memref<1x4x8x8xf32, #tpu.memory_space<vmem>>, vector<1x1x8x8xf32>
    %51 = vector.shape_cast %50 : vector<1x1x8x8xf32> to vector<8x8xf32>
    %52 = vector.shape_cast %49 : vector<8x8xf32> to vector<1x1x8x8xf32>
    tpu.vector_store %arg7[%c0_21, %c1, %c0_22, %c0_23], %52 {strides = array<i32>} : memref<1x4x8x8xf32, #tpu.memory_space<vmem>>, vector<1x1x8x8xf32>,
    %cst_24 = arith.constant dense<0.000000e+00> : vector<8x8xf32>
    %53 = tpu.matmul %49, %36, %cst_24 {dimension_numbers = #tpu.dot_dimension_numbers<[1], [0], [0], [1], [0, 0, 1, 1], [], []>} : vector<8x8xf32>, vector<8x8xf32>, vector<8x8xf32> -> vector<8x8xf32>
    %54 = vector.extract_strided_slice %11 {offsets = [0, 16], sizes = [8, 8], strides = [1, 1]} : vector<8x32xf32> to vector<8x8xf32>
    %55 = vector.extract_strided_slice %12 {offsets = [0, 16], sizes = [8, 8], strides = [1, 1]} : vector<8x32xf32> to vector<8x8xf32>
    %56 = vector.extract_strided_slice %13 {offsets = [0, 16], sizes = [8, 8], strides = [1, 1]} : vector<8x32xf32> to vector<8x8xf32>
    %cst_25 = arith.constant dense<0.000000e+00> : vector<8x8xf32>
    %57 = tpu.matmul %54, %55, %cst_25 {dimension_numbers = #tpu.dot_dimension_numbers<[1], [1], [0], [0], [0, 0, 1, 0], [], []>} : vector<8x8xf32>, vector<8x8xf32>, vector<8x8xf32> -> vector<8x8xf32>
    %58 = vector.broadcast %3 : vector<1x8xf32> to vector<8x8xf32>
    %59 = arith.addf %57, %58 : vector<8x8xf32>
    %cst_26 = arith.constant dense<0xFF800000> : vector<8xf32>
    %60 = vector.multi_reduction <maximumf>, %59, %cst_26 [1] : vector<8x8xf32> to vector<8xf32>
    %61 = vector.shape_cast %60 : vector<8xf32> to vector<8x1xf32>
    %62 = vector.broadcast %61 : vector<8x1xf32> to vector<8x8xf32>
    %63 = arith.subf %59, %62 : vector<8x8xf32>
    %64 = math.exp %63 : vector<8x8xf32>
    %cst_27 = arith.constant dense<0.000000e+00> : vector<8xf32>
    %65 = vector.multi_reduction <add>, %64, %cst_27 [1] : vector<8x8xf32> to vector<8xf32>
    %66 = vector.shape_cast %65 : vector<8xf32> to vector<8x1xf32>
    %67 = tpu.reciprocal %66 : vector<8x1xf32> -> vector<8x1xf32>
    %68 = vector.broadcast %67 : vector<8x1xf32> to vector<8x8xf32>
    %69 = arith.mulf %64, %68 : vector<8x8xf32>
    %c0_28 = arith.constant 0 : index
    %c2 = arith.constant 2 : index
    %c0_29 = arith.constant 0 : index
    %c0_30 = arith.constant 0 : index
    %70 = vector.load %arg7[%c0_28, %c2, %c0_29, %c0_30] : memref<1x4x8x8xf32, #tpu.memory_space<vmem>>, vector<1x1x8x8xf32>
    %71 = vector.shape_cast %70 : vector<1x1x8x8xf32> to vector<8x8xf32>
    %72 = vector.shape_cast %69 : vector<8x8xf32> to vector<1x1x8x8xf32>
    tpu.vector_store %arg7[%c0_28, %c2, %c0_29, %c0_30], %72 {strides = array<i32>} : memref<1x4x8x8xf32, #tpu.memory_space<vmem>>, vector<1x1x8x8xf32>,
    %cst_31 = arith.constant dense<0.000000e+00> : vector<8x8xf32>
    %73 = tpu.matmul %69, %56, %cst_31 {dimension_numbers = #tpu.dot_dimension_numbers<[1], [0], [0], [1], [0, 0, 1, 1], [], []>} : vector<8x8xf32>, vector<8x8xf32>, vector<8x8xf32> -> vector<8x8xf32>
    %74 = vector.extract_strided_slice %11 {offsets = [0, 24], sizes = [8, 8], strides = [1, 1]} : vector<8x32xf32> to vector<8x8xf32>
    %75 = vector.extract_strided_slice %12 {offsets = [0, 24], sizes = [8, 8], strides = [1, 1]} : vector<8x32xf32> to vector<8x8xf32>
    %76 = vector.extract_strided_slice %13 {offsets = [0, 24], sizes = [8, 8], strides = [1, 1]} : vector<8x32xf32> to vector<8x8xf32>
    %cst_32 = arith.constant dense<0.000000e+00> : vector<8x8xf32>
    %77 = tpu.matmul %74, %75, %cst_32 {dimension_numbers = #tpu.dot_dimension_numbers<[1], [1], [0], [0], [0, 0, 1, 0], [], []>} : vector<8x8xf32>, vector<8x8xf32>, vector<8x8xf32> -> vector<8x8xf32>
    %78 = vector.broadcast %3 : vector<1x8xf32> to vector<8x8xf32>
    %79 = arith.addf %77, %78 : vector<8x8xf32>
    %cst_33 = arith.constant dense<0xFF800000> : vector<8xf32>
    %80 = vector.multi_reduction <maximumf>, %79, %cst_33 [1] : vector<8x8xf32> to vector<8xf32>
    %81 = vector.shape_cast %80 : vector<8xf32> to vector<8x1xf32>
    %82 = vector.broadcast %81 : vector<8x1xf32> to vector<8x8xf32>
    %83 = arith.subf %79, %82 : vector<8x8xf32>
    %84 = math.exp %83 : vector<8x8xf32>
    %cst_34 = arith.constant dense<0.000000e+00> : vector<8xf32>
    %85 = vector.multi_reduction <add>, %84, %cst_34 [1] : vector<8x8xf32> to vector<8xf32>
    %86 = vector.shape_cast %85 : vector<8xf32> to vector<8x1xf32>
    %87 = tpu.reciprocal %86 : vector<8x1xf32> -> vector<8x1xf32>
    %88 = vector.broadcast %87 : vector<8x1xf32> to vector<8x8xf32>
    %89 = arith.mulf %84, %88 : vector<8x8xf32>
    %c0_35 = arith.constant 0 : index
    %c3 = arith.constant 3 : index
    %c0_36 = arith.constant 0 : index
    %c0_37 = arith.constant 0 : index
    %90 = vector.load %arg7[%c0_35, %c3, %c0_36, %c0_37] : memref<1x4x8x8xf32, #tpu.memory_space<vmem>>, vector<1x1x8x8xf32>
    %91 = vector.shape_cast %90 : vector<1x1x8x8xf32> to vector<8x8xf32>
    %92 = vector.shape_cast %89 : vector<8x8xf32> to vector<1x1x8x8xf32>
    tpu.vector_store %arg7[%c0_35, %c3, %c0_36, %c0_37], %92 {strides = array<i32>} : memref<1x4x8x8xf32, #tpu.memory_space<vmem>>, vector<1x1x8x8xf32>,
    %cst_38 = arith.constant dense<0.000000e+00> : vector<8x8xf32>
    %93 = tpu.matmul %89, %76, %cst_38 {dimension_numbers = #tpu.dot_dimension_numbers<[1], [0], [0], [1], [0, 0, 1, 1], [], []>} : vector<8x8xf32>, vector<8x8xf32>, vector<8x8xf32> -> vector<8x8xf32>
    %94 = tpu.concatenate %33, %53, %73, %93 in 1 : vector<8x8xf32>, vector<8x8xf32>, vector<8x8xf32>, vector<8x8xf32> -> vector<8x32xf32>
    %c0_39 = arith.constant 0 : index
    %c0_40 = arith.constant 0 : index
    %c0_41 = arith.constant 0 : index
    %95 = vector.load %arg6[%c0_39, %c0_40, %c0_41] : memref<1x8x32xf32, #tpu.memory_space<vmem>>, vector<1x8x32xf32>
    %96 = vector.shape_cast %95 : vector<1x8x32xf32> to vector<8x32xf32>
    %97 = vector.shape_cast %94 : vector<8x32xf32> to vector<1x8x32xf32>
    tpu.vector_store %arg6[%c0_39, %c0_40, %c0_41], %97 {strides = array<i32>} : memref<1x8x32xf32, #tpu.memory_space<vmem>>, vector<1x8x32xf32>,
    return
  }
  func.func @transform_0(%arg0: i32, %arg1: i32) -> (i32, i32, i32) {
    %c0_i32 = arith.constant 0 : i32
    %c0_i32_0 = arith.constant 0 : i32
    %c0_i32_1 = arith.constant 0 : i32
    return %arg1, %c0_i32, %c0_i32_0 : i32, i32, i32
  }
  func.func @transform_1(%arg0: i32, %arg1: i32) -> (i32, i32, i32) {
    %c0_i32 = arith.constant 0 : i32
    %c0_i32_0 = arith.constant 0 : i32
    %c0_i32_1 = arith.constant 0 : i32
    return %arg1, %c0_i32, %c0_i32_0 : i32, i32, i32
  }
  func.func @transform_2(%arg0: i32, %arg1: i32) -> (i32, i32) {
    %c0_i32 = arith.constant 0 : i32
    %c0_i32_0 = arith.constant 0 : i32
    return %c0_i32, %arg0 : i32, i32
  }
  func.func @transform_3(%arg0: i32, %arg1: i32) -> (i32, i32) {
    %c0_i32 = arith.constant 0 : i32
    %c0_i32_0 = arith.constant 0 : i32
    return %c0_i32, %arg0 : i32, i32
  }
  func.func @transform_4(%arg0: i32, %arg1: i32) -> (i32, i32, i32) {
    %c0_i32 = arith.constant 0 : i32
    %c0_i32_0 = arith.constant 0 : i32
    return %arg1, %c0_i32, %arg0 : i32, i32, i32
  }
  func.func @transform_5(%arg0: i32, %arg1: i32) -> (i32, i32, i32, i32) {
    %c0_i32 = arith.constant 0 : i32
    %c0_i32_0 = arith.constant 0 : i32
    %c0_i32_1 = arith.constant 0 : i32
    return %arg1, %arg0, %c0_i32, %c0_i32_0 : i32, i32, i32, i32
  }
}

</mosaic_0001>

<bundles_post_ra>
// kernel: tpu_custom_call.1
= control target key start
LH: loop header
LB: loop body
LE: loop exit
PB: predicated region body
PF: predicated region fallthrough
CT: control target
= control target key end

     0   :  { %s2104_s0 = inlined_call_operand.hbm [shape: f32[2,8,32], index: 0, kind: input, shape index: {}]   ;;  %s2105_s1 = inlined_call_operand.hbm [shape: f32[2,1,8], index: 1, kind: input, shape index: {}]   ;;  %s2106_s2 = inlined_call_operand.hbm [shape: f32[32,96], index: 2, kind: input, shape index: {}]   ;;  %s2107_s3 = inlined_call_operand.vmem [shape: f32[1,96], index: 3, kind: input, shape index: {}]   ;;  %s2108_s4 = inlined_call_operand.hbm [shape: f32[2,8,32], index: 4, kind: output, shape index: {0}]   ;;  %s2109_s5 = inlined_call_operand.hbm [shape: f32[2,4,8,8], index: 5, kind: output, shape index: {1}]  }
   0x1   :  { %2112 = sst [smem:[#allocation19_spill]] %s2104_s0 }
   0x2   :  { %2113 = sst [smem:[#allocation20_spill]] %s2106_s2 }
   0x3   :  { %11 = vsyncpa [#allocation3], 0 }
   0x4   :  { %13 = vsyncpa [#allocation3 + $0x1], 0 }
   0x5   :  { %14 = vsyncpa [#allocation6], 0 }
   0x6   :  { %16 = vsyncpa [#allocation6 + $0x1], 0 }
   0x7   :  { %17 = vsyncpa [#allocation4], 0 }
   0x8   :  { %19 = vsyncpa [#allocation4 + $0x1], 0 }
   0x9   :  { %20 = vsyncpa [#allocation10], 0 }
   0xa   :  { %22 = vsyncpa [#allocation10 + $0x1], 0  ;;  %s1798_s18 = smov 0   ;;  %s1800_s19 = smov 0  }
   0xb   :  { %s1802_s20 = smov 0   ;;  %s1804_s21 = smov 0  }
   0xc   :  { %s1806_s22 = smov 0   ;;  %s1808_s23 = smov 0  }
   0xd LB: > { %2114 = sst [smem:[#allocation16_spill]] %s1730_s20  ;;  %s1829_s24 = sadd.s32 4294967295, %s1742_s23   ;;  %s1742_s23 = sphi %s1808_s23, %s28_s23   ;;  %s1738_s22 = sphi %s1806_s22, %s2134_s22   ;;  %s1734_s21 = sphi %s1804_s21, %s2133_s21   ;;  %s1730_s20 = sphi %s1802_s20, %s2129_s20   ;;  %s1726_s19 = sphi %s1800_s19, %s2132_s19   ;;  %s1722_s18 = sphi %s1798_s18, %s2131_s18  }
   0xe   : > { %s1313_s25 = sadd.s32 4294967294, %s1742_s23   ;;  %p60_p0 = scmp.ne.s32.totalorder %s1726_s19, %s1722_s18 }
   0xf   : > { %p61_p1 = scmp.eq.s32.totalorder %s1829_s24, 0  ;;  %p170_p3 = scmp.eq.s32.totalorder %s1313_s25, 1 }
  0x10   : > { %p1314_p5 = scmp.ge.s32.totalorder %s1742_s23, 1  ;;  %p205_p7 = scmp.lt.s32.totalorder %s1742_s23, 3 }
  0x11   : > { %p1838_p4 = por %p61_p1, %p60_p0  ;;  %p1843_p6 = por %p170_p3, %p60_p0 }
  0x12   : > { %p1848_p8 = pnand %p1314_p5, %p205_p7  ;;  %s1744_s29 = smov [#allocation7]  }
  0x13   : > { %s2116_s27 = scalar_select %p1843_p6, 1, 0 }
  0x14   : > { %s219_s30 = sshll.u32 %s1744_s29, 4  ;;  %p1436_p9 = pneg %p1848_p8  ;;  %s220_s30 = int_to_ptr.vmem [resolvable:$true] %s219_s30 }
  0x15   : > { %p1317_p10 = scmp.ge.s32.totalorder %s1742_s23, 2  ;;  %s37_s7 = sadd.s32 1, %s1738_s22 }
  0x16   : > { %p1857_p11 = pnand %p1436_p9, %p61_p1  ;;  %s1553_s8 = scalar_lea.vmem %s220_s30, 512 }
  0x17   : > { %p1554_p13 = scmp.ne.s32.totalorder %s220_s30, %s1553_s8  ;;  %p1561_p5 = scmp.lt.s32.totalorder %s220_s30, %s220_s30 }
  0x18   : > { %p1544_p12 = pneg %p1857_p11  ;;  %p1562_p7 = scmp.lt.s32.totalorder %s1553_s8, %s1553_s8 }
  0x1a   : > { %p1556_p0 = pnand %p1554_p13, %p1544_p12  ;;  %p1563_p2 = por %p1562_p7, %p1561_p5 }
  0x1c   : > { %p1557_p3 = pneg %p1556_p0 }
  0x1e   : > { %p1564_p6 = pnand %p1563_p2, %p1557_p3 }
  0x20   : > { %1567 = shalt.err (!%p1564_p6)
}
  0x21   : > { %s1745_s9 = smov 128   ;;  %s1746_s10 = smov 8  }
  0x22   : > { %s2119_s2 = sld [smem:[#allocation20_spill]]  ;;  %p38_p2 = scmp.ge.s32.totalorder %s37_s7, 2 }
  0x23   : > { %s47_s13 = sadd.s32 1, %s1730_s20  ;;  %p54_p6 = scmp.ne.s32.totalorder %s1730_s20, %s1726_s19 }
  0x24   : > { %p55_p9 = scmp.eq.s32.totalorder %s1742_s23, 0  ;;  %s2136_s7 = smov (%p38_p2, %s37_s7), 0 }
  0x25   : > { %2120 = sst [smem:[#allocation17_spill]] %s2136_s7  ;;  %p2122_p13 = scmp.eq.s32.totalorder %s1829_s24, 1 }
  0x26   : > { %p1875_p12 = por %p55_p9, %p54_p6  ;;  %s44_s16 = ssub.s32 %s1738_s22, %s2136_s7 }
  0x27   : > { %p1881_p0 = por %p2122_p13, %p54_p6  ;;  %p45_p3 = scmp.eq.s32.totalorder %s44_s16, 0 }
  0x28   : > { %1439 = dma.hbm_to_vmem [thread:$0]  (!%p1857_p11), %s2119_s2, 512, %s220_s30, [#allocation6], %s1745_s9, %s1745_s9, %s1746_s10  }
  0x29   : > { %p1455_p11 = scmp.lt.s32.totalorder %s1742_s23, 2  ;;  %s239_s17 = sand.u32 1, %s1730_s20  }
  0x2a   : > { %s1318_s25 = sshll.u32 %s239_s17, 3  ;;  %s1319_s30 = sshll.u32 %s1738_s22, 7 }
  0x2b   : > { %s1890_s29 = scalar_select %p45_p3, %s1730_s20, %s47_s13  }
  0x2c   : > { %s2125_s0 = sld [smem:[#allocation19_spill]]  ;;  %s243_s10 = scalar_lea.vmem [#allocation2], %s1318_s25 }
  0x2d   : > { %2124 = sst [smem:[#allocation18_spill]] %s1890_s29  ;;  %s250_s11 = sshll.u32 %s243_s10, 4  ;;  %s251_s11 = int_to_ptr.vmem [resolvable:$true] %s250_s11 }
  0x2e   : > { %p1898_p5 = pnand %p1455_p11, %p1875_p12  ;;  %s257_s16 = sand.u32 1, %s1742_s23  }
  0x2f   : > { %s240_s2 = scalar_lea.sflag [#allocation3], %s239_s17  ;;  %s1581_s13 = scalar_lea.vmem %s251_s11, 128 }
  0x30   : > { %p1570_p7 = pneg %p1898_p5  ;;  %p1582_p2 = scmp.ne.s32.totalorder %s251_s11, %s1581_s13 }
  0x31   : > { %s1747_s25 = smov [#allocation2]  }
  0x32   : > { %s248_s9 = scalar_lea.hbm %s2125_s0, %s1319_s30  ;;  %p1584_p6 = pnand %p1582_p2, %p1570_p7 }
  0x33   : > { %s1586_s30 = sshll.u32 %s1747_s25, 4  ;;  %s1587_s30 = int_to_ptr.vmem [resolvable:$false] %s1586_s30 }
  0x34   : > { %p1585_p9 = pneg %p1584_p6  ;;  %s1588_s14 = scalar_lea.vmem %s1587_s30, 256 }
  0x35   : > { %p1589_p12 = scmp.lt.s32.totalorder %s251_s11, %s1587_s30  ;;  %p1590_p13 = scmp.lt.s32.totalorder %s1588_s14, %s1581_s13 }
  0x37   : > { %p1591_p11 = por %p1590_p13, %p1589_p12 }
  0x39   : > { %p1592_p3 = pnand %p1591_p11, %p1585_p9 }
  0x3b   : > { %1595 = shalt.err (!%p1592_p3)
}
  0x3c   : > { %1443 = dma.hbm_to_vmem [thread:$0]  (!%p1898_p5), %s248_s9, 128, %s251_s11, %s240_s2  }
  0x3d   : > { %s1320_s6 = sshll.u32 %s1738_s22, 4  ;;  %s260_s8 = scalar_lea.vmem [#allocation5], %s239_s17 }
  0x3e   : > { %s267_s10 = sshll.u32 %s260_s8, 4  ;;  %s265_s29 = scalar_lea.hbm %s2105_s1, %s1320_s6  ;;  %s268_s10 = int_to_ptr.vmem [resolvable:$true] %s267_s10 }
  0x3f   : > { %s258_s25 = scalar_lea.sflag [#allocation6], %s257_s16  ;;  %s1609_s20 = scalar_lea.vmem %s268_s10, 16 }
  0x40   : > { %p1610_p2 = scmp.ne.s32.totalorder %s268_s10, %s1609_s20  ;;  %s1748_s13 = smov [#allocation5]  }
  0x41   : > { %s1614_s30 = sshll.u32 %s1748_s13, 4  ;;  %s1615_s30 = int_to_ptr.vmem [resolvable:$false] %s1614_s30 }
  0x42   : > { %p1612_p6 = pnand %p1610_p2, %p1570_p7  ;;  %s1616_s14 = scalar_lea.vmem %s1615_s30, 32 }
  0x43   : > { %p1617_p12 = scmp.lt.s32.totalorder %s268_s10, %s1615_s30  ;;  %p1618_p13 = scmp.lt.s32.totalorder %s1616_s14, %s1609_s20 }
  0x44   : > { %p1613_p9 = pneg %p1612_p6 }
  0x45   : > { %p1619_p11 = por %p1618_p13, %p1617_p12 }
  0x47   : > { %p1620_p3 = pnand %p1619_p11, %p1613_p9 }
  0x49   : > { %1623 = shalt.err (!%p1620_p3)
}
  0x4a   : > { %1446 = dma.hbm_to_vmem [thread:$0]  (!%p1898_p5), %s265_s29, 16, %s268_s10, %s258_s25  }
  0x4b   : > { %276 = sbr.rel (%p1848_p8) target bundleno = 1295 (0x50f), region = 36  ;;  %s1922_s0 = sand.u32 (!%p1848_p8), 1, %s1726_s19  }
  0x4c   : > { %s1322_s2 = sshll.u32 (!%p1848_p8), %s1922_s0, 3  ;;  %s279_s7 = scalar_lea.sflag (!%p1848_p8), [#allocation3], %s1922_s0 }
  0x4d   : > { %s282_s20 = scalar_lea.vmem (!%p1848_p8), [#allocation2], %s1322_s2 }
  0x50   : > { %1701 = dma.done.wait (%p1838_p4), %s279_s7, 128  }
  0x51   : > { %1703 = vsyncadd (%p1838_p4), %s279_s7, 4294967168  ;;  %s287_s28 = sand.u32 1, %s1829_s24   ;;  %s290_s29 = scalar_lea.vmem [#allocation5], %s1922_s0 }
  0x52   : > { %s288_s17 = scalar_lea.sflag [#allocation6], %s287_s28 }
  0x53   : > { %1705 = dma.done.wait (%p1838_p4), %s288_s17, 16  }
  0x54   : > { %1707 = vsyncadd (%p1838_p4), %s288_s17, 4294967280 }
  0x55   : > { %1709 = dma.done.wait (%p61_p1), [#allocation6], 512  }
  0x56   : > { %1711 = vsyncadd (%p61_p1), [#allocation6], 4294966784  ;;  %v1749_v0 = vmov 0.0   ;;  %vm1750_vm0 = vmmov 0   ;;  %v342_v1 = vld [vmem:[#allocation7 + $0x18] sm:$0xff]  ;;  %v341_v2 = vld [vmem:[#allocation7 + $0x10] sm:$0xff] }
  0x57   : > { %1373 = vmatprep.subr.mxu0 %v1749_v0  ;;  %1381 = vmatprep.mubr.msk.f32.mxu0 %vm1750_vm0, %v1749_v0  ;;  %v340_v3 = vld [vmem:[#allocation7 + $0x8] sm:$0xff]  ;;  %v339_v4 = vld [vmem:[#allocation7] sm:$0xff]  ;;  %vm350_vm1 = vcmask 261120   ;;  %s1751_s9 = smov 96   ;;  %s1752_s11 = smov 120   ;;  %vm434_vm2 = vcmask 64512  }
  0x58   : > { %1384 = vmatprep.subr.mxu1 %v1749_v0  ;;  %1386 = vmatprep.mubr.msk.f32.mxu1 %vm1750_vm0, %v1749_v0  ;;  %v337_v5 = vld [vmem:[%s282_s20] sm:$0xff]  ;;  %s1753_s12 = smov 88   ;;  %s1754_s16 = smov 80  }
  0x59   : > { %1374 = vmatpush3.msra.mxu0 %v342_v1  ;;  %v1326_v6 = vld [vmem:[%s2107_s3] ss:$0 sm:$0xff]  ;;  %s1755_s6 = smov 112   ;;  %s1756_s8 = smov 72  }
  0x5a   : > { %1375 = vmatprep.subr.mxu0 %v1749_v0  ;;  %s1757_s10 = smov 104   ;;  %v1328_v18 = vld [vmem:[%s290_s29] ss:$0 sm:$0xff]  ;;  %s1758_s25 = smov 56  }
  0x5b   : > { %1376 = vmatpush3.msra.mxu0 %v341_v2  ;;  %s1759_s13 = smov 64   ;;  %s1760_s30 = smov 48  }
  0x5c   : > { %1377 = vmatprep.subr.mxu0 %v1749_v0  ;;  %s1761_s14 = smov 40   ;;  %s1325_s7 = sshll.u32 %s1922_s0, 5 }
  0x5d   : > { %1378 = vmatpush3.msra.mxu0 %v340_v3  ;;  %s1998_s20 = scalar_lea.vmem [#allocation9], %s1325_s7  ;;  %s1762_s28 = smov 8  }
  0x5e   : > { %1379 = vmatprep.subr.mxu0 %v1749_v0  ;;  %s1351_s17 = sshll.u32 %s1734_s21, 9  ;;  %s1152_s29 = sshll.u32 %s1998_s20, 4  ;;  %s2028_s29 = int_to_ptr.vmem [resolvable:$true] %s1152_s29 }
  0x5f   : > { %1380 = vmatpush3.msra.mxu0 %v339_v4 }
  0x60   : > { %1382 = vmatmul.mubr.msk.f32.vlgmr.msra.gmra.mxu0 %vm350_vm1, %v337_v5  ;;  %1394 = vmatprep.subr.mxu0 %v1749_v0 }
  0x61   : > { %1396 = vmatprep.mubr.msk.f32.mxu0 %vm1750_vm0, %v1749_v0 }
 0x120   : > { %v420_v7 = vpop.f32.mrf.mxu0 }
 0x121   : > { %v1958_v8 = vadd.f32 %v1326_v6, %v420_v7 }
 0x122   : > { %v1383_v9 = vpop.f32.mrf.mxu0 }
 0x123   : > { %432 = vrot.lane.b32.xlu0 %v1958_v8, %s1751_s9  ;;  %v424_v10 = vmul.f32 0.35355338, %v1958_v8  ;;  %s2026_s9 = scalar_lea.hbm %s2109_s5, %s1351_s17 }
 0x125   : > { %598 = vrot.lane.b32.xlu1 %v424_v10, %s1752_s11  ;;  %s1123_s11 = scalar_lea.sflag [#allocation10], %s1922_s0 }
 0x127   : > { %600 = vrot.lane.b32.xlu0 %v1958_v8, %s1753_s12  ;;  %s1624_s12 = scalar_lea.vmem %s2028_s29, 512 }
 0x128   : > { %p1625_p1 = scmp.ne.s32.totalorder %s2028_s29, %s1624_s12 }
 0x129   : > { %767 = vrot.lane.b32.xlu1 %v1958_v8, %s1754_s16  ;;  %s1763_s16 = smov [#allocation9]  }
 0x12a   : > { %p1626_p4 = pnand %p1625_p1, %p1881_p0 }
 0x12b   : > { %765 = vrot.lane.b32.xlu0 %v424_v10, %s1755_s6  ;;  %s1628_s6 = sshll.u32 %s1763_s16, 4  ;;  %s1629_s6 = int_to_ptr.vmem [resolvable:$false] %s1628_s6 }
 0x12c   : > { %p1627_p8 = pneg %p1626_p4  ;;  %p1631_p5 = scmp.lt.s32.totalorder %s2028_s29, %s1629_s6 }
 0x12d   : > { %934 = vrot.lane.b32.xlu1 %v1958_v8, %s1756_s8  ;;  %s1630_s8 = scalar_lea.vmem %s1629_s6, 1024 }
 0x12e   : > { %p1632_p7 = scmp.lt.s32.totalorder %s1630_s8, %s1624_s12 }
 0x12f   : > { %932 = vrot.lane.b32.xlu0 %v424_v10, %s1757_s10 }
 0x130   : > { %p1633_p2 = por %p1632_p7, %p1631_p5 }
 0x132   : > { %p1634_p6 = pnand %p1633_p2, %p1627_p8 }
 0x195   : > { %v433_v11 = vpop.permute.xlu0 %432 }
 0x196   : > { %1385 = vmatpush3.xpose.msk.msra.mxu1 %vm434_vm2, %v433_v11 }
 0x197   : > { %v599_v12 = vpop.permute.xlu1 %598  ;;  %1389 = vmatprep.subr.mxu1 %v1749_v0 }
 0x199   : > { %v601_v13 = vpop.permute.xlu0 %600  ;;  %1387 = vmatmul.mubr.msk.f32.vlgmr.msra.gmra.mxu1 %vm434_vm2, %v424_v10 }
 0x19a   : > { %1395 = vmatpush3.xpose.msk.msra.mxu0 %vm434_vm2, %v601_v13  ;;  %1391 = vmatprep.mubr.msk.f32.mxu1 %vm1750_vm0, %v1749_v0 }
 0x19b   : > { %v768_v14 = vpop.permute.xlu1 %767  ;;  %1404 = vmatprep.subr.mxu0 %v1749_v0 }
 0x19d   : > { %1397 = vmatmul.mubr.msk.f32.vlgmr.msra.gmra.mxu0 %vm434_vm2, %v599_v12  ;;  %v766_v15 = vpop.permute.xlu0 %765 }
 0x19e   : > { %1405 = vmatpush3.xpose.msk.msra.mxu0 %vm434_vm2, %v768_v14  ;;  %1406 = vmatprep.mubr.msk.f32.mxu0 %vm1750_vm0, %v1749_v0 }
 0x19f   : > { %1414 = vmatprep.subr.mxu0 %v1749_v0  ;;  %v935_v16 = vpop.permute.xlu1 %934 }
 0x1a1   : > { %1407 = vmatmul.mubr.msk.f32.vlgmr.msra.gmra.mxu0 %vm434_vm2, %v766_v15  ;;  %v933_v17 = vpop.permute.xlu0 %932 }
 0x1a2   : > { %1415 = vmatpush3.xpose.msk.msra.mxu0 %vm434_vm2, %v935_v16  ;;  %1416 = vmatprep.mubr.msk.f32.mxu0 %vm1750_vm0, %v1749_v0 }
 0x1a5   : > { %1417 = vmatmul.mubr.msk.f32.vlgmr.msra.gmra.mxu0 %vm434_vm2, %v933_v17 }
 0x259   : > { %v506_v19 = vpop.f32.mrf.mxu1 }
 0x25a   : > { %v507_v20 = vadd.f32 %v1328_v18, %v506_v19 }
 0x25b   : > { %v1388_v21 = vpop.f32.mrf.mxu1 }
 0x25c   : > { %v510_v22 = vsel %vm434_vm2, %v507_v20, -inf }
 0x25d   : > { %511 = vmax.xlane.f32.xlu1 %v510_v22  ;;  %v672_v23 = vpop.f32.mrf.mxu0 }
 0x25e   : > { %v673_v24 = vadd.f32 %v1328_v18, %v672_v23 }
 0x25f   : > { %v1398_v25 = vpop.f32.mrf.mxu0 }
 0x260   : > { %v676_v26 = vsel %vm434_vm2, %v673_v24, -inf }
 0x261   : > { %677 = vmax.xlane.f32.xlu0 %v676_v26  ;;  %v839_v27 = vpop.f32.mrf.mxu0 }
 0x262   : > { %v840_v28 = vadd.f32 %v1328_v18, %v839_v27 }
 0x263   : > { %v1408_v29 = vpop.f32.mrf.mxu0 }
 0x264   : > { %v843_v30 = vsel %vm434_vm2, %v840_v28, -inf }
 0x265   : > { %844 = vmax.xlane.f32.xlu0 %v843_v30  ;;  %v1006_v31 = vpop.f32.mrf.mxu0 }
 0x266   : > { %v1007_v32 = vadd.f32 %v1328_v18, %v1006_v31 }
 0x267   : > { %v1418_v33 = vpop.f32.mrf.mxu0 }
 0x268   : > { %v1010_v34 = vsel %vm434_vm2, %v1007_v32, -inf }
 0x269   : > { %1011 = vmax.xlane.f32.xlu1 %v1010_v34 }
 0x27a   : > { %689 = vrot.lane.b32.xlu1 %v1958_v8, %s1758_s25 }
 0x2e6   : > { %v512_v35 = vpop.xlane.xlu1 %511 }
 0x2e7   : > { %v513_v36 = vsub.f32 %v507_v20, %v512_v35 }
 0x2e9   : > { %v514_v37 = vmul.f32 1.442695, %v513_v36 }
 0x2ea   : > { %v678_v38 = vpop.xlane.xlu0 %677 }
 0x2eb   : > { %1526 = vpow2.f32 %v514_v37  ;;  %v679_v39 = vsub.f32 %v673_v24, %v678_v38 }
 0x2ed   : > { %v680_v40 = vmul.f32 1.442695, %v679_v39 }
 0x2ee   : > { %v845_v50 = vpop.xlane.xlu0 %844 }
 0x2ef   : > { %1528 = vpow2.f32 %v680_v40  ;;  %v846_v51 = vsub.f32 %v840_v28, %v845_v50 }
 0x2f1   : > { %v847_v52 = vmul.f32 1.442695, %v846_v51 }
 0x2f2   : > { %v1012_v41 = vpop.xlane.xlu1 %1011 }
 0x2f3   : > { %v1013_v42 = vsub.f32 %v1007_v32, %v1012_v41 }
 0x2f5   : > { %v1014_v43 = vmul.f32 1.442695, %v1013_v42 }
 0x2f6   : > { %v690_v55 = vpop.permute.xlu1 %689 }
 0x2f7   : > { %1530 = vpow2.f32 %v1014_v43 }
 0x2f8   : > { %v1527_v44 = vpop.eup %1526  ;;  %1532 = vpow2.f32 %v847_v52 }
 0x2f9   : > { %v516_v45 = vsel %vm434_vm2, %v1527_v44, 0.0 }
 0x2fa   : > { %517 = vadd.xlane.f32.xlu0 %v516_v45 }
 0x2fc   : > { %v1529_v46 = vpop.eup %1528 }
 0x2fd   : > { %v682_v47 = vsel %vm434_vm2, %v1529_v46, 0.0 }
 0x2fe   : > { %683 = vadd.xlane.f32.xlu1 %v682_v47 }
 0x304   : > { %v1531_v48 = vpop.eup %1530 }
 0x305   : > { %v1016_v49 = vsel %vm434_vm2, %v1531_v48, 0.0  ;;  %v1533_v53 = vpop.eup %1532 }
 0x306   : > { %1017 = vadd.xlane.f32.xlu1 %v1016_v49  ;;  %v849_v54 = vsel %vm434_vm2, %v1533_v53, 0.0 }
 0x310   : > { %522 = vrot.lane.b32.xlu0 %v1958_v8, %s1759_s13 }
 0x317   : > { %856 = vrot.lane.b32.xlu1 %v1958_v8, %s1760_s30 }
 0x32f   : > { %850 = vadd.xlane.f32.xlu0 %v849_v54 }
 0x345   : > { %1023 = vrot.lane.b32.xlu0 %v1958_v8, %s1761_s14 }
 0x383   : > { %v518_v56 = vpop.xlane.xlu0 %517 }
 0x384   : > { %1534 = vrcp.f32 %v518_v56 }
 0x387   : > { %v523_v57 = vpop.permute.xlu0 %522  ;;  %v684_v58 = vpop.xlane.xlu1 %683 }
 0x388   : > { %1536 = vrcp.f32 %v684_v58  ;;  %1390 = vmatpush3.msra.mxu1 %v523_v57 }
 0x389   : > { %1399 = vmatprep.subr.mxu1 %v1749_v0 }
 0x38f   : > { %v1018_v59 = vpop.xlane.xlu1 %1017 }
 0x390   : > { %1538 = vrcp.f32 %v1018_v59 }
 0x391   : > { %v1535_v60 = vpop.eup %1534 }
 0x392   : > { %v520_v61 = vmul.f32 %v1535_v60, %v1527_v44 }
 0x393   : > { %v857_v1 = vpop.permute.xlu1 %856 }
 0x394   : > { %521 = vst.msk [vmem:[%s1998_s20] sm:$0xff] %vm434_vm2, %v520_v61  ;;  %1392 = vmatmul.mubr.msk.f32.vlgmr.msra.gmra.mxu1 %vm434_vm2, %v520_v61 }
 0x395   : > { %v1537_v62 = vpop.eup %1536  ;;  %1400 = vmatpush3.msra.mxu1 %v690_v55  ;;  %1401 = vmatprep.mubr.msk.f32.mxu1 %vm1750_vm0, %v1749_v0 }
 0x396   : > { %1409 = vmatprep.subr.mxu1 %v1749_v0  ;;  %v686_v63 = vmul.f32 %v1537_v62, %v1529_v46 }
 0x398   : > { %1334 = vst.msk [vmem:[%s1998_s20 + $0x8] sm:$0xff] %vm434_vm2, %v686_v63  ;;  %1402 = vmatmul.mubr.msk.f32.vlgmr.msra.gmra.mxu1 %vm434_vm2, %v686_v63 }
 0x399   : > { %1410 = vmatpush3.msra.mxu1 %v857_v1  ;;  %1411 = vmatprep.mubr.msk.f32.mxu1 %vm1750_vm0, %v1749_v0 }
 0x39a   : > { %1419 = vmatprep.subr.mxu1 %v1749_v0 }
 0x39d   : > { %v1539_v2 = vpop.eup %1538 }
 0x39e   : > { %v1020_v3 = vmul.f32 %v1539_v2, %v1531_v48 }
 0x3a0   : > { %1342 = vst.msk [vmem:[%s1998_s20 + $0x18] sm:$0xff] %vm434_vm2, %v1020_v3 }
 0x3b8   : > { %v851_v4 = vpop.xlane.xlu0 %850 }
 0x3b9   : > { %1540 = vrcp.f32 %v851_v4 }
 0x3bc   : > { %v1024_v7 = vpop.permute.xlu0 %1023 }
 0x3c6   : > { %v1541_v5 = vpop.eup %1540 }
 0x3c7   : > { %v853_v6 = vmul.f32 %v1541_v5, %v1533_v53 }
 0x3c9   : > { %1338 = vst.msk [vmem:[%s1998_s20 + $0x10] sm:$0xff] %vm434_vm2, %v853_v6  ;;  %1412 = vmatmul.mubr.msk.f32.vlgmr.msra.gmra.mxu1 %vm434_vm2, %v853_v6 }
 0x3ca   : > { %1420 = vmatpush3.msra.mxu1 %v1024_v7  ;;  %1421 = vmatprep.mubr.msk.f32.mxu1 %vm1750_vm0, %v1749_v0 }
 0x3cd   : > { %1422 = vmatmul.mubr.msk.f32.vlgmr.msra.gmra.mxu1 %vm434_vm2, %v1020_v3 }
 0x454   : > { %v594_v8 = vpop.f32.mrf.mxu1 }
 0x456   : > { %v1393_v9 = vpop.f32.mrf.mxu1 }
 0x458   : > { %v761_v10 = vpop.f32.mrf.mxu1 }
 0x459   : > { %1100 = vrot.lane.b32.xlu1 %v761_v10, %s1762_s28 }
 0x45a   : > { %v1403_v11 = vpop.f32.mrf.mxu1 }
 0x45b   : > { %1637 = shalt.err (!%p1634_p6)
}
 0x45c   : > { %s1638_s10 = scalar_lea.hbm %s2026_s9, 512  ;;  %s1642_s30 = scalar_lea.hbm %s2109_s5, 1024 }
 0x45d   : > { %p1639_p9 = scmp.ne.s32.totalorder %s2026_s9, %s1638_s10  ;;  %p1643_p11 = scmp.lt.s32.totalorder %s2026_s9, %s2109_s5 }
 0x45e   : > { %p1644_p3 = scmp.lt.s32.totalorder %s1642_s30, %s1638_s10 }
 0x45f   : > { %p1640_p12 = pnand %p1639_p9, %p1881_p0 }
 0x460   : > { %p1645_p1 = por %p1644_p3, %p1643_p11 }
 0x461   : > { %p1641_p13 = pneg %p1640_p12 }
 0x463   : > { %p1646_p4 = pnand %p1645_p1, %p1641_p13 }
 0x465   : > { %1649 = shalt.err (!%p1646_p4)
}
 0x466   : > { %s1764_s20 = smov 128   ;;  %s1765_s17 = smov 16   ;;  %vm1112_vm3 = vcmask 130048   ;;  %vm1114_vm4 = vcmask 195584  }
 0x467   : > { %1433 = dma.vmem_to_hbm [thread:$0]  (%p1881_p0), %s2028_s29, 512, %s2026_s9, %s1123_s11, %s1764_s20, %s1764_s20, %s1762_s28  }
 0x468   : > { %s1766_s24 = smov 24   ;;  %s1346_s26 = sshll.u32 %s1734_s21, 7 }
 0x469   : > { %s325_s12 = scalar_lea.vmem [#allocation8], %s1322_s2  ;;  %s2061_s9 = scalar_lea.hbm %s2108_s4, %s1346_s26 }
 0x46a   : > { %s1137_s16 = sshll.u32 %s325_s12, 4  ;;  %s1118_s11 = scalar_lea.sflag [#allocation4], %s1922_s0  ;;  %s1138_s16 = int_to_ptr.vmem [resolvable:$true] %s1137_s16 }
 0x46b   : > { %s1650_s6 = scalar_lea.vmem %s1138_s16, 128  ;;  %s1767_s21 = smov [#allocation8]  }
 0x46c   : > { %p1651_p8 = scmp.ne.s32.totalorder %s1138_s16, %s1650_s6  ;;  %s1654_s2 = sshll.u32 %s1767_s21, 4  ;;  %s1655_s2 = int_to_ptr.vmem [resolvable:$false] %s1654_s2 }
 0x46d   : > { %s1656_s8 = scalar_lea.vmem %s1655_s2, 256  ;;  %p1657_p2 = scmp.lt.s32.totalorder %s1138_s16, %s1655_s2 }
 0x46e   : > { %p1652_p5 = pnand %p1651_p8, %p1881_p0  ;;  %p1658_p6 = scmp.lt.s32.totalorder %s1656_s8, %s1650_s6 }
 0x470   : > { %p1653_p7 = pneg %p1652_p5  ;;  %p1659_p9 = por %p1658_p6, %p1657_p2 }
 0x472   : > { %p1660_p12 = pnand %p1659_p9, %p1653_p7 }
 0x489   : > { %v928_v0 = vpop.f32.mrf.mxu1 }
 0x48a   : > { %1104 = vrot.lane.b32.xlu0 %v928_v0, %s1765_s17 }
 0x48b   : > { %v1413_v12 = vpop.f32.mrf.mxu1 }
 0x48d   : > { %v1095_v13 = vpop.f32.mrf.mxu1 }
 0x48e   : > { %1108 = vrot.lane.b32.xlu1 %v1095_v13, %s1766_s24 }
 0x48f   : > { %v1423_v14 = vpop.f32.mrf.mxu1 }
 0x4cb   : > { %v1101_v15 = vpop.permute.xlu1 %1100 }
 0x4cc   : > { %v1111_v17 = vsel %vm434_vm2, %v594_v8, %v1101_v15 }
 0x4fc   : > { %v1105_v16 = vpop.permute.xlu0 %1104 }
 0x4fd   : > { %v1113_v18 = vsel %vm1112_vm3, %v1111_v17, %v1105_v16 }
 0x500   : > { %v1109_v19 = vpop.permute.xlu1 %1108 }
 0x501   : > { %v1115_v20 = vsel %vm1114_vm4, %v1113_v18, %v1109_v19 }
 0x502   : > { %1116 = vst.msk [vmem:[%s325_s12] sm:$0xff] %vm350_vm1, %v1115_v20 }
 0x503   : > { %1663 = shalt.err (!%p1660_p12)
}
 0x504   : > { %s1664_s10 = scalar_lea.hbm %s2061_s9, 128  ;;  %s1668_s13 = scalar_lea.hbm %s2108_s4, 256 }
 0x505   : > { %p1665_p13 = scmp.ne.s32.totalorder %s2061_s9, %s1664_s10  ;;  %p1669_p1 = scmp.lt.s32.totalorder %s2061_s9, %s2108_s4 }
 0x506   : > { %p1670_p4 = scmp.lt.s32.totalorder %s1668_s13, %s1664_s10 }
 0x507   : > { %p1666_p11 = pnand %p1665_p13, %p1881_p0 }
 0x508   : > { %p1671_p8 = por %p1670_p4, %p1669_p1 }
 0x509   : > { %p1667_p3 = pneg %p1666_p11 }
 0x50b   : > { %p1672_p5 = pnand %p1671_p8, %p1667_p3 }
 0x50d   : > { %1675 = shalt.err (!%p1672_p5)
}
 0x50e   : > { %1432 = dma.vmem_to_hbm [thread:$0]  (%p1881_p0), %s1138_s16, 128, %s2061_s9, %s1118_s11  }
 0x50f PF: > { %s1167_s7 = sand.u32 1, %s1722_s18   ;;  %p2127_p7 = scmp.ne.s32.totalorder %s2116_s27, 0 }
 0x510   : > { %s1168_s20 = scalar_lea.sflag [#allocation4], %s1167_s7 }
 0x511   : > { %p1448_p2 = pnand %p1317_p10, %p2127_p7 }
 0x513   : > { %p1449_p6 = pneg %p1448_p2 }
 0x515   : > { %1713 = dma.done.wait (%p1449_p6), %s1168_s20, 128  }
 0x516   : > { %1715 = vsyncadd (%p1449_p6), %s1168_s20, 4294967168  ;;  %s1177_s17 = scalar_lea.sflag [#allocation10], %s1167_s7 }
 0x517   : > { %1717 = dma.done.wait (%p1449_p6), %s1177_s17, 512  }
 0x518   : > { %1719 = vsyncadd (%p1449_p6), %s1177_s17, 4294966784  ;;  %s28_s23 = sadd.s32 1, %s1742_s23   ;;  %s2128_s15 = sld [smem:[#allocation16_spill]] }
 0x519   : > { %p25_p9 = scmp.ge.s32.totalorder %s28_s23, 4   ;;  %s2129_s20 = sld [smem:[#allocation18_spill]] }
 0x51a   : > { %s2130_s24 = sld [smem:[#allocation17_spill]]  ;;  %s2131_s18 = smov %s1726_s19 }
 0x51b   : > { %s2133_s21 = smov %s1738_s22 }
 0x51c   :  { %27 = sbr.rel (!%p25_p9) target bundleno = 13 (0xd), region = 122 }
 0x51e   : > { %s2132_s19 = smov %s2128_s15 }
 0x520   : > { %s2134_s22 = smov %s2130_s24 }
 0x521   :  { %1182 = vsyncpa [#allocation3], 1 }
 0x522   :  { %1184 = vsyncpa [#allocation3 + $0x1], 1 }
 0x523   :  { %1185 = vsyncpa [#allocation6], 1 }
 0x524   :  { %1187 = vsyncpa [#allocation6 + $0x1], 1 }
 0x525   :  { %1188 = vsyncpa [#allocation4], 1 }
 0x526   :  { %1190 = vsyncpa [#allocation4 + $0x1], 1 }
 0x527   :  { %1191 = vsyncpa [#allocation10], 1 }
 0x528   :  { %1193 = vsyncpa [#allocation10 + $0x1], 1 }

</bundles_post_ra>
